<compile_context>
chip_gen: v5e
topology: v5e:2x2
jax: 0.10.0
libtpu: 0.0.40
codegen_flags: <defaults>
</compile_context>

<pallas_src>
import functools

import jax
import jax.numpy as jnp
from jax import lax
from jax.experimental import pallas as pl
from jax.experimental.pallas import tpu as pltpu


def _round_up(x, m):
    return ((x + m - 1) // m) * m


def _vmem_capacity_bytes():
    try:
        info = pltpu.get_tpu_info()
        for name in ("vmem_capacity_bytes", "vmem_size_bytes", "vmem_bytes"):
            v = getattr(info, name, None)
            if v:
                return int(v)
    except Exception:
        pass
    return 64 << 20   # conservative fallback: v7x physical VMEM


def _main_kernel_vmem_need(t, d, itemsize):
    return (2 * 2 * t * d * itemsize   # img + txt input tiles, double-buffered
            + 2 * 8 * t * 4            # (8, t) f32 output block, double-buffered
            + 8 * t * t * 4            # f32 sim / hinge temporaries
            + (2 << 20))               # headroom


def _select_tile_b(batch, d, itemsize, budget):
    b8 = _round_up(batch, 8)
    if b8 <= 256:
        # Small batch: aim for two row blocks so both v7x TensorCores get work.
        t = b8 if b8 <= 8 else _round_up((b8 + 1) // 2, 8)
    else:
        t = 128
        for cand in (512, 256, 128):   # multiples of 128 for the MXU
            if (_main_kernel_vmem_need(cand, d, itemsize) <= budget
                    and _round_up(batch, cand) // cand >= 2):
                t = cand
                break
    # D-aware fallback: shrink until the working set fits the scoped-VMEM budget.
    while t > 8 and _main_kernel_vmem_need(t, d, itemsize) > budget:
        t = max(8, _round_up(t // 2, 8))
    return t


def _hinge_tile_kernel(img_ref, txt_ref, out_ref, *, delta, tile_b):
    i = pl.program_id(0)
    j = pl.program_id(1)

    @pl.when(j == 0)
    def _():
        out_ref[...] = jnp.zeros_like(out_ref)

    # Inputs are pre-normalized; the image rows already carry 1/temperature,
    # so this dot IS the scaled similarity. Contract the feature axis of both
    # operands -> no explicit transpose before the MXU.
    sim = lax.dot_general(
        img_ref[...], txt_ref[...],
        dimension_numbers=(((1,), (1,)), ((), ())),
        preferred_element_type=jnp.float32,
    )                                                   # (tile_b, tile_b) f32

    hinge = jnp.maximum(jnp.float32(0.0), jnp.float32(delta) - sim)

    def _accumulate(tile):
        # (t, t) -> (t//8, 8, t) is a free leading-dim split; the axis-0 sum is
        # a chain of elementwise (8, t) VPU adds — no XLU tree reduce and no
        # serializing SMEM scalar read-modify-write per grid step.
        out_ref[...] += jnp.sum(tile.reshape(tile_b // 8, 8, tile_b), axis=0)

    @pl.when(i != j)
    def _():                                            # off-diagonal fast path
        _accumulate(hinge)

    @pl.when(i == j)
    def _():                                            # diagonal tiles only
        r = lax.broadcasted_iota(jnp.int32, (tile_b, tile_b), 0)
        c = lax.broadcasted_iota(jnp.int32, (tile_b, tile_b), 1)
        diag_val = jnp.maximum(sim, jnp.float32(-10000.0))
        _accumulate(jnp.where(r == c, diag_val, hinge))


def hinge_loss(image_embeddings, text_embeddings, *, temperature, delta,
               reduction="mean", tile_b=None):
    """Pallas TPU implementation of HingeLoss.forward."""
    assert image_embeddings.shape == text_embeddings.shape
    B, D = image_embeddings.shape

    # One mem-bound pre-pass (outside the O(B^2) loop): L2-normalize both
    # matrices, fold 1/temperature into the image rows, keep the input dtype
    # so bf16 inputs feed the MXU in bf16 (f32 accumulation).
    def _pre_normalize(x, scale):
        xf = x.astype(jnp.float32)
        # torch F.normalize: x / max(||x||, eps), eps=1e-12
        #   == x * rsqrt(max(||x||^2, eps^2))
        inv = lax.rsqrt(
            jnp.maximum(jnp.sum(xf * xf, axis=1, keepdims=True),
                        jnp.float32(1e-24))) * jnp.float32(scale)
        return (xf * inv).astype(x.dtype)

    img = _pre_normalize(image_embeddings, 1.0 / float(temperature))
    txt = _pre_normalize(text_embeddings, 1.0)

    itemsize = jnp.dtype(img.dtype).itemsize
    vmem_cap = _vmem_capacity_bytes()
    # ~96 MiB budget on 128-MiB parts (v5e/v6e), ~48 MiB on 64-MiB v7x.
    vmem_budget = min((vmem_cap * 3) // 4, 100 << 20)

    if tile_b is None:
        tile_b = _select_tile_b(B, D, itemsize, vmem_budget)
    tile_b = max(8, _round_up(int(tile_b), 8))

    Bp = _round_up(B, tile_b)
    if Bp != B:
        pad = Bp - B
        img = jnp.pad(img, ((0, pad), (0, 0)))
        txt = jnp.pad(txt, ((0, pad), (0, 0)))

    n_i = Bp // tile_b
    n_j = Bp // tile_b

    vmem_limit = int(min(max(_main_kernel_vmem_need(tile_b, D, itemsize),
                             16 << 20), vmem_budget))

    kernel = functools.partial(_hinge_tile_kernel, delta=float(delta),
                               tile_b=tile_b)

    partials = pl.pallas_call(
        kernel,
        out_shape=jax.ShapeDtypeStruct((n_i * 8, tile_b), jnp.float32),
        grid_spec=pltpu.PrefetchScalarGridSpec(
            num_scalar_prefetch=0,
            grid=(n_i, n_j),                       # j = reduction axis, last
            in_specs=[
                pl.BlockSpec((tile_b, D), lambda i, j: (i, 0)),
                pl.BlockSpec((tile_b, D), lambda i, j: (j, 0)),
            ],
            out_specs=pl.BlockSpec((8, tile_b), lambda i, j: (i, 0)),
        ),
        compiler_params=pltpu.CompilerParams(
            dimension_semantics=("parallel", "arbitrary"),
            vmem_limit_bytes=vmem_limit,
        ),
    )(img, txt)

    total = jnp.sum(partials)

    # Zero-padded rows/cols have sim == 0 exactly: padded diagonal cells
    # contribute 0 and every padded off-diagonal cell contributes
    # max(0, delta). Remove that analytically instead of masking every tile.
    if Bp != B:
        pad_offdiag = Bp * Bp - B * B - (Bp - B)
        total = total - jnp.float32(max(0.0, float(delta)) * pad_offdiag)

    if reduction == "sum":
        return total
    return total / jnp.float32(B * B)   # 'mean' (and any other string, as in the torch code)


def hinge_loss_ref(image_embeddings, text_embeddings, *, temperature, delta,
                   reduction="mean"):
    """Pure-JAX reference (mirrors the PyTorch module)."""
    eps = 1e-12
    img = image_embeddings.astype(jnp.float32)
    txt = text_embeddings.astype(jnp.float32)
    img_n = img / jnp.maximum(jnp.linalg.norm(img, axis=1, keepdims=True), eps)
    txt_n = txt / jnp.maximum(jnp.linalg.norm(txt, axis=1, keepdims=True), eps)
    sim = img_n @ txt_n.T / temperature
    B = sim.shape[0]
    eye = jnp.eye(B, dtype=jnp.float32)
    score = (eye * delta - (delta - sim)) * (2 * eye - jnp.ones((B, B), jnp.float32))
    fill = eye * (-10000.0)
    final = jnp.maximum(fill, score)
    return jnp.sum(final) if reduction == "sum" else jnp.mean(final)


if __name__ == "__main__":
    temperature = 0.07
    delta = 0.2

    # Test 1: small single-tile path (B=8, D=32), f32, mean reduction.
    k1, k2 = jax.random.split(jax.random.PRNGKey(0))
    img1 = jax.random.normal(k1, (8, 32), dtype=jnp.float32)
    txt1 = jax.random.normal(k2, (8, 32), dtype=jnp.float32)
    out1 = jax.block_until_ready(
        hinge_loss(img1, txt1, temperature=temperature, delta=delta,
                   reduction="mean"))
    ref1 = hinge_loss_ref(img1, txt1, temperature=temperature, delta=delta,
                          reduction="mean")
    assert jnp.allclose(out1, ref1, atol=1e-4, rtol=1e-4), (out1, ref1)

    # Test 2: non-multiple batch with a forced tiny tile -> multi-tile grid,
    # off-diagonal fast path, accumulation and the analytic padding correction.
    k3, k4 = jax.random.split(jax.random.PRNGKey(1))
    img2 = jax.random.normal(k3, (20, 40), dtype=jnp.float32)
    txt2 = jax.random.normal(k4, (20, 40), dtype=jnp.float32)
    out2 = jax.block_until_ready(
        hinge_loss(img2, txt2, temperature=temperature, delta=delta,
                   reduction="sum", tile_b=8))
    ref2 = hinge_loss_ref(img2, txt2, temperature=temperature, delta=delta,
                          reduction="sum")
    assert jnp.allclose(out2, ref2, atol=2e-3, rtol=1e-4), (out2, ref2)

    # Test 3: bf16 inputs (bf16 MXU feed, f32 accumulate), default tiling
    # (two row blocks -> both v7x TensorCores get work).
    k5, k6 = jax.random.split(jax.random.PRNGKey(2))
    img3 = jax.random.normal(k5, (16, 64), dtype=jnp.bfloat16)
    txt3 = jax.random.normal(k6, (16, 64), dtype=jnp.bfloat16)
    out3 = jax.block_until_ready(
        hinge_loss(img3, txt3, temperature=temperature, delta=delta,
                   reduction="mean"))
    ref3 = hinge_loss_ref(img3, txt3, temperature=temperature, delta=delta,
                          reduction="mean")
    assert jnp.allclose(out3, ref3, atol=5e-2, rtol=5e-2), (out3, ref3)

    print("KERNEL_OK")
</pallas_src>

<mosaic_0001>
module attributes {stable_mosaic.version = 11 : i64} {
  func.func @_hinge_tile_kernel(%arg0: i32, %arg1: i32, %arg2: memref<8x32xf32, #tpu.memory_space<vmem>>, %arg3: memref<8x32xf32, #tpu.memory_space<vmem>>, %arg4: memref<8x8xf32, #tpu.memory_space<vmem>>) attributes {dimension_semantics = [#tpu.dimension_semantics<parallel>, #tpu.dimension_semantics<arbitrary>], iteration_bounds = array<i64: 1, 1>, scalar_prefetch = 0 : i64, scratch_operands = 0 : i64, tpu.core_type = #tpu.core_type<tc>, window_params = [{transform_indices = @transform_0, window_bounds = array<i64: 8, 32>}, {transform_indices = @transform_1, window_bounds = array<i64: 8, 32>}, {transform_indices = @transform_2, window_bounds = array<i64: 8, 8>}]} {
    %c0_i32 = arith.constant 0 : i32
    %0 = arith.cmpi eq, %arg1, %c0_i32 : i32
    %1 = arith.extui %0 : i1 to i32
    %c0_i32_0 = arith.constant 0 : i32
    %2 = arith.cmpi ne, %1, %c0_i32_0 : i32
    scf.if %2 {
      %cst_8 = arith.constant 0.000000e+00 : f32
      %16 = vector.broadcast %cst_8 : f32 to vector<8x8xf32>
      %c0_9 = arith.constant 0 : index
      %c0_10 = arith.constant 0 : index
      %17 = vector.load %arg4[%c0_9, %c0_10] : memref<8x8xf32, #tpu.memory_space<vmem>>, vector<8x8xf32>
      tpu.vector_store %arg4[%c0_9, %c0_10], %16 {strides = array<i32>} : memref<8x8xf32, #tpu.memory_space<vmem>>, vector<8x8xf32>,
    } else {
    }
    %c0 = arith.constant 0 : index
    %c0_1 = arith.constant 0 : index
    %3 = vector.load %arg2[%c0, %c0_1] : memref<8x32xf32, #tpu.memory_space<vmem>>, vector<8x32xf32>
    %c0_2 = arith.constant 0 : index
    %c0_3 = arith.constant 0 : index
    %4 = vector.load %arg3[%c0_2, %c0_3] : memref<8x32xf32, #tpu.memory_space<vmem>>, vector<8x32xf32>
    %cst = arith.constant dense<0.000000e+00> : vector<8x8xf32>
    %5 = tpu.matmul %3, %4, %cst {dimension_numbers = #tpu.dot_dimension_numbers<[1], [1], [0], [0], [0, 0, 1, 0], [], []>} : vector<8x32xf32>, vector<8x32xf32>, vector<8x8xf32> -> vector<8x8xf32>
    %cst_4 = arith.constant 2.000000e-01 : f32
    %6 = vector.broadcast %cst_4 : f32 to vector<8x8xf32>
    %7 = arith.subf %6, %5 : vector<8x8xf32>
    %cst_5 = arith.constant 0.000000e+00 : f32
    %8 = vector.broadcast %cst_5 : f32 to vector<8x8xf32>
    %9 = arith.maximumf %8, %7 : vector<8x8xf32>
    %10 = arith.cmpi ne, %arg0, %arg1 : i32
    %11 = arith.extui %10 : i1 to i32
    %c0_i32_6 = arith.constant 0 : i32
    %12 = arith.cmpi ne, %11, %c0_i32_6 : i32
    scf.if %12 {
      %c0_8 = arith.constant 0 : index
      %c0_9 = arith.constant 0 : index
      %16 = vector.load %arg4[%c0_8, %c0_9] : memref<8x8xf32, #tpu.memory_space<vmem>>, vector<8x8xf32>
      %17 = vector.shape_cast %9 : vector<8x8xf32> to vector<1x8x8xf32>
      %cst_10 = arith.constant dense<0.000000e+00> : vector<8x8xf32>
      %18 = vector.multi_reduction <add>, %17, %cst_10 [0] : vector<1x8x8xf32> to vector<8x8xf32>
      %19 = arith.addf %16, %18 : vector<8x8xf32>
      %c0_11 = arith.constant 0 : index
      %c0_12 = arith.constant 0 : index
      %20 = vector.load %arg4[%c0_11, %c0_12] : memref<8x8xf32, #tpu.memory_space<vmem>>, vector<8x8xf32>
      tpu.vector_store %arg4[%c0_11, %c0_12], %19 {strides = array<i32>} : memref<8x8xf32, #tpu.memory_space<vmem>>, vector<8x8xf32>,
    } else {
    }
    %13 = arith.cmpi eq, %arg0, %arg1 : i32
    %14 = arith.extui %13 : i1 to i32
    %c0_i32_7 = arith.constant 0 : i32
    %15 = arith.cmpi ne, %14, %c0_i32_7 : i32
    scf.if %15 {
      %16 = tpu.iota {dimensions = array<i32: 0>} : vector<8x8xi32>
      %17 = tpu.iota {dimensions = array<i32: 1>} : vector<8x8xi32>
      %cst_8 = arith.constant -1.000000e+04 : f32
      %18 = vector.broadcast %cst_8 : f32 to vector<8x8xf32>
      %19 = arith.maximumf %5, %18 : vector<8x8xf32>
      %20 = arith.cmpi eq, %16, %17 : vector<8x8xi32>
      %21 = arith.select %20, %19, %9 : vector<8x8xi1>, vector<8x8xf32>
      %c0_9 = arith.constant 0 : index
      %c0_10 = arith.constant 0 : index
      %22 = vector.load %arg4[%c0_9, %c0_10] : memref<8x8xf32, #tpu.memory_space<vmem>>, vector<8x8xf32>
      %23 = vector.shape_cast %21 : vector<8x8xf32> to vector<1x8x8xf32>
      %cst_11 = arith.constant dense<0.000000e+00> : vector<8x8xf32>
      %24 = vector.multi_reduction <add>, %23, %cst_11 [0] : vector<1x8x8xf32> to vector<8x8xf32>
      %25 = arith.addf %22, %24 : vector<8x8xf32>
      %c0_12 = arith.constant 0 : index
      %c0_13 = arith.constant 0 : index
      %26 = vector.load %arg4[%c0_12, %c0_13] : memref<8x8xf32, #tpu.memory_space<vmem>>, vector<8x8xf32>
      tpu.vector_store %arg4[%c0_12, %c0_13], %25 {strides = array<i32>} : memref<8x8xf32, #tpu.memory_space<vmem>>, vector<8x8xf32>,
    } else {
    }
    return
  }
  func.func @transform_0(%arg0: i32, %arg1: i32) -> (i32, i32) {
    %c0_i32 = arith.constant 0 : i32
    %c0_i32_0 = arith.constant 0 : i32
    return %arg0, %c0_i32 : i32, i32
  }
  func.func @transform_1(%arg0: i32, %arg1: i32) -> (i32, i32) {
    %c0_i32 = arith.constant 0 : i32
    %c0_i32_0 = arith.constant 0 : i32
    return %arg1, %c0_i32 : i32, i32
  }
  func.func @transform_2(%arg0: i32, %arg1: i32) -> (i32, i32) {
    %c0_i32 = arith.constant 0 : i32
    %c0_i32_0 = arith.constant 0 : i32
    return %arg0, %c0_i32 : i32, i32
  }
}

</mosaic_0001>

<bundles_post_ra>
// kernel: tpu_custom_call.1
= control target key start
LH: loop header
LB: loop body
LE: loop exit
PB: predicated region body
PF: predicated region fallthrough
CT: control target
= control target key end

     0   :  { %7 = vsyncpa [#allocation3], 0  ;;  %s234_s0 = inlined_call_operand.hbm [shape: f32[8,32], index: 0, kind: input, shape index: {}]   ;;  %s235_s1 = inlined_call_operand.hbm [shape: f32[8,32], index: 1, kind: input, shape index: {}]   ;;  %s236_s2 = inlined_call_operand.hbm [shape: f32[8,8], index: 2, kind: output, shape index: {}]  }
   0x1   :  { %8 = vsyncpa [#allocation6], 0 }
   0x2   :  { %9 = vsyncpa [#allocation4], 0  ;;  %s15_s11 = sshll.u32 %s234_s0, 4  ;;  %s204_s12 = smov [#allocation2]   ;;  %s16_s11 = int_to_ptr.hbm [resolvable:$true] %s15_s11 }
   0x3   :  { %s17_s13 = sshll.u32 %s204_s12, 4  ;;  %s26_s16 = sshll.u32 %s235_s1, 4  ;;  %s18_s13 = int_to_ptr.vmem [resolvable:$true] %s17_s13  ;;  %s27_s16 = int_to_ptr.hbm [resolvable:$true] %s26_s16 }
   0x4   :  { %20 = dma.hbm_to_vmem [thread:$0]  %s16_s11, 128, %s18_s13, [#allocation3]  }
   0x5   :  { %s205_s17 = smov [#allocation5]  }
   0x6   :  { %s28_s18 = sshll.u32 %s205_s17, 4  ;;  %s29_s18 = int_to_ptr.vmem [resolvable:$true] %s28_s18 }
   0x7   :  { %31 = dma.hbm_to_vmem [thread:$0]  %s27_s16, 128, %s29_s18, [#allocation6]  }
   0x8   :  { %198 = dma.done.wait [#allocation3], 128  }
   0x9   :  { %199 = vsyncadd [#allocation3], 4294967168 }
   0xa   :  { %200 = dma.done.wait [#allocation6], 128  }
   0xb   :  { %201 = vsyncadd [#allocation6], 4294967168  ;;  %vm44_vm0 = vcmask 64512   ;;  %v206_v0 = vmov 0.0   ;;  %vm48_vm1 = vcmask 261120   ;;  %v47_v1 = vld [vmem:[#allocation5] sm:$0xff]  ;;  %v90_v3 = vlaneseq }
   0xc   :  { %45 = vst.msk [vmem:[#allocation7] sm:$0xff] %vm44_vm0, %v206_v0  ;;  %120 = vmatpush.xpose.msk.msra.mxu0 %vm48_vm1, %v47_v1  ;;  %v46_v2 = vld [vmem:[#allocation2] sm:$0xff]  ;;  %s207_s0 = smov [#allocation7]   ;;  %s109_s21 = sshll.u32 %s236_s2, 4  ;;  %s110_s21 = int_to_ptr.hbm [resolvable:$true] %s109_s21 }
   0xd   :  { %v91_v4 = vshrl.u32 %v90_v3, 7  ;;  %v93_v5 = vand.u32 127, %v90_v3  ;;  %s107_s1 = sshll.u32 %s207_s0, 4  ;;  %s108_s1 = int_to_ptr.vmem [resolvable:$true] %s107_s1 }
   0xf   :  { %121 = vmatmul.msk.f32.vlgmr.msra.gmra.mxu0 %vm48_vm1, %v46_v2  ;;  %vm95_vm2 = vcmp.eq.s32.totalorder %v91_v4, %v93_v5 }
  0x13   :  { %v97_v10 = vld [vmem:[#allocation7] sm:$0xff] }
  0x8c   :  { %v72_v6 = vpop.f32.mrf.mxu0 }
  0x8d   :  { %v75_v7 = vsub.f32 0.2, %v72_v6  ;;  %v94_v9 = vmax.f32 %v72_v6, -10000.0 }
  0x8f   :  { %v76_v8 = vmax.f32 %v75_v7, 0.0 }
  0x91   :  { %v96_v11 = vsel %vm95_vm2, %v94_v9, %v76_v8 }
  0x92   :  { %v99_v12 = vadd.f32 %v97_v10, %v96_v11 }
  0x94   :  { %101 = vst.msk [vmem:[#allocation7] sm:$0xff] %vm44_vm0, %v99_v12 }
  0x95   :  { %112 = dma.vmem_to_hbm [thread:$0]  %s108_s1, 128, %s110_s21, [#allocation4]  }
  0x96   :  { %202 = dma.done.wait [#allocation4], 128  }
  0x97   :  { %203 = vsyncadd [#allocation4], 4294967168 }
  0x98   :  { %117 = vsyncpa [#allocation3], 1 }
  0x99   :  { %118 = vsyncpa [#allocation6], 1 }
  0x9a   :  { %119 = vsyncpa [#allocation4], 1 }

</bundles_post_ra>
